<compile_context>
chip_gen: v5e
topology: v5e:2x2
jax: 0.10.0
libtpu: 0.0.40
codegen_flags: <defaults>
</compile_context>

<pallas_src>
import functools

import jax
import jax.numpy as jnp
from jax import lax
from jax.experimental import pallas as pl
from jax.experimental.pallas import tpu as pltpu

_BIG_NEG = -1e30      # score / edge-value sentinel for padded neighbour rows
_UNROLL_K = 16        # unroll the knockout loop for k <= this


def _round_up(v, m):
    return (v + m - 1) // m * m


def lgpr_kernel(lhs_ref, rhs_ref, x_ref, out_ref, *, channels, k):
    """One (batch, centre-tile) grid step.

    lhs_ref : (1, Np, Ca)  augmented neighbours: [:, 0:C]   = 2*xc (matmul),
                                                 [:, C]     = -||xc||^2 (valid) / -1e30 (pad),
                                                 [:, C+1:2C+1] = xc edge values (valid) / -1e30 (pad)
    rhs_ref : (1, Ca, TI)  augmented centres:    [0:C] = xc, [C] = 1, rest 0
    x_ref   : (1, C,  TI)  original (un-centred) centre features, for the copies
    out_ref : (1, 3, C, TI)  [0] = x copy, [1] = edge feature, [2] = x copy
    """
    lhs = lhs_ref[0]                                    # (Np, Ca)
    rhs = rhs_ref[0]                                    # (Ca, TI)
    x_cn = x_ref[0]                                     # (C, TI)

    # S[j, i] = 2<xc_j, xc_i> - ||xc_j||^2  (= -||xc_j - xc_i||^2 up to a per-centre
    # constant, so the per-centre ranking matches torch's knn). Single MXU matmul.
    s = jnp.dot(lhs, rhs, preferred_element_type=jnp.float32)   # (Np, TI)

    # k-th largest score per centre (column) via k-step max + knockout.
    neg_inf = jnp.float32(-jnp.inf)
    thresh = jnp.max(s, axis=0, keepdims=True)                  # (1, TI)
    if k > 1:
        if k <= _UNROLL_K:
            work = s
            for _ in range(k - 1):
                work = jnp.where(work >= thresh, neg_inf, work)
                thresh = jnp.max(work, axis=0, keepdims=True)
        else:
            def knock(_, carry):
                work, th = carry
                work = jnp.where(work >= th, neg_inf, work)
                return work, jnp.max(work, axis=0, keepdims=True)
            _, thresh = lax.fori_loop(0, k - 1, knock, (s, thresh))
    # TODO(synk): torch.topk's arbitrary tie-breaking is not reproduced; on exact
    # score ties the selection below includes every tied neighbour.

    # Additive 0 / -inf neighbour mask; `s` is dead after this line, so at most two
    # (Np, TI) slabs are live at any point (VMEM-pressure feedback).
    penalty = jnp.where(s >= thresh, jnp.float32(0.0), neg_inf)  # (Np, TI)

    # Edge feature: per channel, max over selected neighbours of xc[c, j] minus
    # xc[c, i]; padded rows hold -1e30 edge values so they never win the max, and
    # the per-batch centring shift cancels in the subtraction.
    edge_base = channels + 1
    diff_rows = []
    for c in range(channels):
        col = lhs[:, edge_base + c:edge_base + c + 1]            # (Np, 1)
        nb = jnp.max(penalty + col, axis=0, keepdims=True)       # (1, TI)
        diff_rows.append(nb - rhs[c:c + 1, :])
    diff = jnp.concatenate(diff_rows, axis=0)                    # (C, TI)

    out_ref[0, 0] = x_cn
    out_ref[0, 1] = diff
    out_ref[0, 2] = x_cn


def _pick_tile(n_pad, batch):
    """Largest of {512, 256, 128} dividing n_pad that keeps ~3 live (n_pad, tile)
    f32 slabs under ~24 MiB (safe on v7x 64 MiB VMEM and v5e's default scoped
    limit); then halved if needed so the parallel grid has >= 2 programs (v7x has
    2 TensorCores)."""
    budget = 24 * 1024 * 1024
    ti = 128
    for t in (512, 256, 128):
        if n_pad % t == 0 and 3 * n_pad * t * 4 <= budget:
            ti = t
            break
    while batch * (n_pad // ti) < 2 and ti > 128:
        ti //= 2
    # TODO(synk): for N >~ 16K the neighbour (row) axis should be tiled as well
    # (per-tile top-k candidates merged by a final knockout); not needed here.
    return ti


def lgpr_forward(x, k):
    """x : (B, C, N) array, k : int in [1, N]. Returns (B, 3C, N) float32 with
    channels [x, max_j(x_j - x_i) over k-NN (self included), x]."""
    B, C, N = x.shape
    k = int(k)
    if not 1 <= k <= N:
        raise ValueError(f"k must be in [1, {N}], got {k}")
    x = x.astype(jnp.float32)

    # Per-batch mean-centring: translation-invariant for both the k-NN ranking and
    # the edge feature, avoids f32 cancellation in the expanded distance.
    xc = x - jnp.mean(x, axis=2, keepdims=True)                  # (B, C, N)

    n_pad = _round_up(N, 128)
    c_aug = _round_up(2 * C + 1, 8)
    tile_n = _pick_tile(n_pad, B)

    xt = jnp.transpose(xc, (0, 2, 1))                            # (B, N, C)
    xx = jnp.sum(xt * xt, axis=2)                                # (B, N)

    lhs = jnp.zeros((B, n_pad, c_aug), jnp.float32)
    lhs = lhs.at[:, :N, :C].set(2.0 * xt)
    lhs = lhs.at[:, :N, C].set(-xx)
    lhs = lhs.at[:, N:, C].set(_BIG_NEG)                         # pad rows: never selected
    lhs = lhs.at[:, :N, C + 1:2 * C + 1].set(xt)                 # edge-value lanes
    lhs = lhs.at[:, N:, C + 1:2 * C + 1].set(_BIG_NEG)           # pad rows: never the max

    rhs = jnp.zeros((B, c_aug, n_pad), jnp.float32)
    rhs = rhs.at[:, :C, :N].set(xc)
    rhs = rhs.at[:, C, :].set(1.0)

    x_p = jnp.zeros((B, C, n_pad), jnp.float32).at[:, :, :N].set(x)

    grid = (B, n_pad // tile_n)
    kernel = functools.partial(lgpr_kernel, channels=C, k=k)

    out = pl.pallas_call(
        kernel,
        out_shape=jax.ShapeDtypeStruct((B, 3, C, n_pad), jnp.float32),
        grid_spec=pltpu.PrefetchScalarGridSpec(
            num_scalar_prefetch=0,
            grid=grid,   # (batch outer, centre tiles inner)
            in_specs=[
                # lhs block depends only on b: the full (n_pad, c_aug) neighbour slab
                # is DMA'd once per batch element and revisited across centre tiles —
                # do NOT reorder the grid or this gets re-fetched every tile.
                pl.BlockSpec((1, n_pad, c_aug), lambda b, i: (b, 0, 0)),
                pl.BlockSpec((1, c_aug, tile_n), lambda b, i: (b, 0, i)),
                pl.BlockSpec((1, C, tile_n), lambda b, i: (b, 0, i)),
            ],
            out_specs=pl.BlockSpec((1, 3, C, tile_n), lambda b, i: (b, 0, 0, i)),
        ),
        compiler_params=pltpu.CompilerParams(
            dimension_semantics=("parallel", "parallel"),
            # Tile choice keeps live slabs <= ~24 MiB; 48 MiB scoped limit is valid
            # on every generation (v5e/v6e: 128 MiB physical, v7x: 64 MiB).
            vmem_limit_bytes=48 * 1024 * 1024),
    )(lhs, rhs, x_p)

    # (B, 3, C, n_pad) -> (B, 3C, N): contiguous reshape + drop padded centres.
    return out.reshape(B, 3 * C, n_pad)[:, :, :N]


def lgpr_reference(x, k):
    """Pure-JAX port of the torch module (knn top-k + gather), for validation."""
    x = x.astype(jnp.float32)
    x_nc = jnp.transpose(x, (0, 2, 1))                           # (B, N, C)
    inner = jnp.einsum("bic,bjc->bij", x_nc, x_nc)
    xx = jnp.sum(x_nc * x_nc, axis=-1)
    pd = 2.0 * inner - xx[:, :, None] - xx[:, None, :]           # -||x_i - x_j||^2
    _, idx = lax.top_k(pd, k)                                    # (B, N, k)
    feat = jax.vmap(lambda pts, ind: pts[ind])(x_nc, idx)        # (B, N, k, C)
    diff = jnp.max(feat - x_nc[:, :, None, :], axis=2)           # (B, N, C)
    out_nc = jnp.concatenate([x_nc, diff, x_nc], axis=-1)        # (B, N, 3C)
    return jnp.transpose(out_nc, (0, 2, 1))                      # (B, 3C, N)


if __name__ == "__main__":
    key = jax.random.PRNGKey(0)
    k1, k2, k3 = jax.random.split(key, 3)
    # (key, B, C, N, k):
    #   tiny base case; non-multiple-of-128 N with k=1 (padding path); multi-tile
    #   centres (pads to 640) with k=N (exercises padded-row exclusion + fori knockout).
    cases = [(k1, 2, 3, 16, 4), (k2, 1, 3, 200, 1), (k3, 2, 3, 520, 520)]
    for kk, B, C, N, K in cases:
        x = jax.random.normal(kk, (B, C, N), dtype=jnp.float32)
        out = jax.block_until_ready(lgpr_forward(x, K))
        assert out.shape == (B, 3 * C, N) and out.dtype == jnp.float32
        ref = lgpr_reference(x, K)
        err = float(jnp.max(jnp.abs(out - ref)))
        assert err <= 1e-4, (B, C, N, K, err)
    print("KERNEL_OK")
</pallas_src>

<mosaic_0001>
module attributes {stable_mosaic.version = 11 : i64} {
  func.func @lgpr_kernel(%arg0: i32, %arg1: i32, %arg2: memref<1x128x8xf32, #tpu.memory_space<vmem>>, %arg3: memref<1x8x128xf32, #tpu.memory_space<vmem>>, %arg4: memref<1x3x128xf32, #tpu.memory_space<vmem>>, %arg5: memref<1x3x3x128xf32, #tpu.memory_space<vmem>>) attributes {dimension_semantics = [#tpu.dimension_semantics<parallel>, #tpu.dimension_semantics<parallel>], iteration_bounds = array<i64: 2, 1>, scalar_prefetch = 0 : i64, scratch_operands = 0 : i64, tpu.core_type = #tpu.core_type<tc>, window_params = [{transform_indices = @transform_0, window_bounds = array<i64: 1, 128, 8>}, {transform_indices = @transform_1, window_bounds = array<i64: 1, 8, 128>}, {transform_indices = @transform_2, window_bounds = array<i64: 1, 3, 128>}, {transform_indices = @transform_3, window_bounds = array<i64: 1, 3, 3, 128>}]} {
    %c0 = arith.constant 0 : index
    %c0_0 = arith.constant 0 : index
    %c0_1 = arith.constant 0 : index
    %0 = vector.load %arg2[%c0, %c0_0, %c0_1] : memref<1x128x8xf32, #tpu.memory_space<vmem>>, vector<1x128x8xf32>
    %1 = vector.shape_cast %0 : vector<1x128x8xf32> to vector<128x8xf32>
    %c0_2 = arith.constant 0 : index
    %c0_3 = arith.constant 0 : index
    %c0_4 = arith.constant 0 : index
    %2 = vector.load %arg3[%c0_2, %c0_3, %c0_4] : memref<1x8x128xf32, #tpu.memory_space<vmem>>, vector<1x8x128xf32>
    %3 = vector.shape_cast %2 : vector<1x8x128xf32> to vector<8x128xf32>
    %c0_5 = arith.constant 0 : index
    %c0_6 = arith.constant 0 : index
    %c0_7 = arith.constant 0 : index
    %4 = vector.load %arg4[%c0_5, %c0_6, %c0_7] : memref<1x3x128xf32, #tpu.memory_space<vmem>>, vector<1x3x128xf32>
    %5 = vector.shape_cast %4 : vector<1x3x128xf32> to vector<3x128xf32>
    %cst = arith.constant dense<0.000000e+00> : vector<128x128xf32>
    %6 = tpu.matmul %1, %3, %cst {dimension_numbers = #tpu.dot_dimension_numbers<[1], [0], [0], [1], [0, 0, 1, 1], [], []>} : vector<128x8xf32>, vector<8x128xf32>, vector<128x128xf32> -> vector<128x128xf32>
    %cst_8 = arith.constant dense<0xFF800000> : vector<128xf32>
    %7 = vector.multi_reduction <maximumf>, %6, %cst_8 [0] : vector<128x128xf32> to vector<128xf32>
    %8 = vector.shape_cast %7 : vector<128xf32> to vector<1x128xf32>
    %9 = vector.broadcast %8 : vector<1x128xf32> to vector<128x128xf32>
    %10 = arith.cmpf oge, %6, %9 : vector<128x128xf32>
    %cst_9 = arith.constant 0xFF800000 : f32
    %11 = vector.broadcast %cst_9 : f32 to vector<128x128xf32>
    %12 = arith.select %10, %11, %6 : vector<128x128xi1>, vector<128x128xf32>
    %cst_10 = arith.constant dense<0xFF800000> : vector<128xf32>
    %13 = vector.multi_reduction <maximumf>, %12, %cst_10 [0] : vector<128x128xf32> to vector<128xf32>
    %14 = vector.shape_cast %13 : vector<128xf32> to vector<1x128xf32>
    %15 = vector.broadcast %14 : vector<1x128xf32> to vector<128x128xf32>
    %16 = arith.cmpf oge, %12, %15 : vector<128x128xf32>
    %cst_11 = arith.constant 0xFF800000 : f32
    %17 = vector.broadcast %cst_11 : f32 to vector<128x128xf32>
    %18 = arith.select %16, %17, %12 : vector<128x128xi1>, vector<128x128xf32>
    %cst_12 = arith.constant dense<0xFF800000> : vector<128xf32>
    %19 = vector.multi_reduction <maximumf>, %18, %cst_12 [0] : vector<128x128xf32> to vector<128xf32>
    %20 = vector.shape_cast %19 : vector<128xf32> to vector<1x128xf32>
    %21 = vector.broadcast %20 : vector<1x128xf32> to vector<128x128xf32>
    %22 = arith.cmpf oge, %18, %21 : vector<128x128xf32>
    %cst_13 = arith.constant 0xFF800000 : f32
    %23 = vector.broadcast %cst_13 : f32 to vector<128x128xf32>
    %24 = arith.select %22, %23, %18 : vector<128x128xi1>, vector<128x128xf32>
    %cst_14 = arith.constant dense<0xFF800000> : vector<128xf32>
    %25 = vector.multi_reduction <maximumf>, %24, %cst_14 [0] : vector<128x128xf32> to vector<128xf32>
    %26 = vector.shape_cast %25 : vector<128xf32> to vector<1x128xf32>
    %27 = vector.broadcast %26 : vector<1x128xf32> to vector<128x128xf32>
    %28 = arith.cmpf oge, %6, %27 : vector<128x128xf32>
    %cst_15 = arith.constant 0.000000e+00 : f32
    %cst_16 = arith.constant 0xFF800000 : f32
    %29 = vector.broadcast %cst_15 : f32 to vector<128x128xf32>
    %30 = vector.broadcast %cst_16 : f32 to vector<128x128xf32>
    %31 = arith.select %28, %29, %30 : vector<128x128xi1>, vector<128x128xf32>
    %32 = vector.extract_strided_slice %1 {offsets = [0, 4], sizes = [128, 1], strides = [1, 1]} : vector<128x8xf32> to vector<128x1xf32>
    %33 = vector.broadcast %32 : vector<128x1xf32> to vector<128x128xf32>
    %34 = arith.addf %31, %33 : vector<128x128xf32>
    %cst_17 = arith.constant dense<0xFF800000> : vector<128xf32>
    %35 = vector.multi_reduction <maximumf>, %34, %cst_17 [0] : vector<128x128xf32> to vector<128xf32>
    %36 = vector.shape_cast %35 : vector<128xf32> to vector<1x128xf32>
    %37 = vector.extract_strided_slice %3 {offsets = [0, 0], sizes = [1, 128], strides = [1, 1]} : vector<8x128xf32> to vector<1x128xf32>
    %38 = arith.subf %36, %37 : vector<1x128xf32>
    %39 = vector.extract_strided_slice %1 {offsets = [0, 5], sizes = [128, 1], strides = [1, 1]} : vector<128x8xf32> to vector<128x1xf32>
    %40 = vector.broadcast %39 : vector<128x1xf32> to vector<128x128xf32>
    %41 = arith.addf %31, %40 : vector<128x128xf32>
    %cst_18 = arith.constant dense<0xFF800000> : vector<128xf32>
    %42 = vector.multi_reduction <maximumf>, %41, %cst_18 [0] : vector<128x128xf32> to vector<128xf32>
    %43 = vector.shape_cast %42 : vector<128xf32> to vector<1x128xf32>
    %44 = vector.extract_strided_slice %3 {offsets = [1, 0], sizes = [1, 128], strides = [1, 1]} : vector<8x128xf32> to vector<1x128xf32>
    %45 = arith.subf %43, %44 : vector<1x128xf32>
    %46 = vector.extract_strided_slice %1 {offsets = [0, 6], sizes = [128, 1], strides = [1, 1]} : vector<128x8xf32> to vector<128x1xf32>
    %47 = vector.broadcast %46 : vector<128x1xf32> to vector<128x128xf32>
    %48 = arith.addf %31, %47 : vector<128x128xf32>
    %cst_19 = arith.constant dense<0xFF800000> : vector<128xf32>
    %49 = vector.multi_reduction <maximumf>, %48, %cst_19 [0] : vector<128x128xf32> to vector<128xf32>
    %50 = vector.shape_cast %49 : vector<128xf32> to vector<1x128xf32>
    %51 = vector.extract_strided_slice %3 {offsets = [2, 0], sizes = [1, 128], strides = [1, 1]} : vector<8x128xf32> to vector<1x128xf32>
    %52 = arith.subf %50, %51 : vector<1x128xf32>
    %53 = tpu.concatenate %38, %45, %52 in 0 : vector<1x128xf32>, vector<1x128xf32>, vector<1x128xf32> -> vector<3x128xf32>
    %c0_20 = arith.constant 0 : index
    %c0_21 = arith.constant 0 : index
    %c0_22 = arith.constant 0 : index
    %c0_23 = arith.constant 0 : index
    %54 = vector.load %arg5[%c0_20, %c0_21, %c0_22, %c0_23] : memref<1x3x3x128xf32, #tpu.memory_space<vmem>>, vector<1x1x3x128xf32>
    %55 = vector.shape_cast %54 : vector<1x1x3x128xf32> to vector<3x128xf32>
    %56 = vector.shape_cast %5 : vector<3x128xf32> to vector<1x1x3x128xf32>
    tpu.vector_store %arg5[%c0_20, %c0_21, %c0_22, %c0_23], %56 {strides = array<i32>} : memref<1x3x3x128xf32, #tpu.memory_space<vmem>>, vector<1x1x3x128xf32>,
    %c0_24 = arith.constant 0 : index
    %c1 = arith.constant 1 : index
    %c0_25 = arith.constant 0 : index
    %c0_26 = arith.constant 0 : index
    %57 = vector.load %arg5[%c0_24, %c1, %c0_25, %c0_26] : memref<1x3x3x128xf32, #tpu.memory_space<vmem>>, vector<1x1x3x128xf32>
    %58 = vector.shape_cast %57 : vector<1x1x3x128xf32> to vector<3x128xf32>
    %59 = vector.shape_cast %53 : vector<3x128xf32> to vector<1x1x3x128xf32>
    tpu.vector_store %arg5[%c0_24, %c1, %c0_25, %c0_26], %59 {strides = array<i32>} : memref<1x3x3x128xf32, #tpu.memory_space<vmem>>, vector<1x1x3x128xf32>,
    %c0_27 = arith.constant 0 : index
    %c2 = arith.constant 2 : index
    %c0_28 = arith.constant 0 : index
    %c0_29 = arith.constant 0 : index
    %60 = vector.load %arg5[%c0_27, %c2, %c0_28, %c0_29] : memref<1x3x3x128xf32, #tpu.memory_space<vmem>>, vector<1x1x3x128xf32>
    %61 = vector.shape_cast %60 : vector<1x1x3x128xf32> to vector<3x128xf32>
    %62 = vector.shape_cast %5 : vector<3x128xf32> to vector<1x1x3x128xf32>
    tpu.vector_store %arg5[%c0_27, %c2, %c0_28, %c0_29], %62 {strides = array<i32>} : memref<1x3x3x128xf32, #tpu.memory_space<vmem>>, vector<1x1x3x128xf32>,
    return
  }
  func.func @transform_0(%arg0: i32, %arg1: i32) -> (i32, i32, i32) {
    %c0_i32 = arith.constant 0 : i32
    %c0_i32_0 = arith.constant 0 : i32
    %c0_i32_1 = arith.constant 0 : i32
    return %arg0, %c0_i32, %c0_i32_0 : i32, i32, i32
  }
  func.func @transform_1(%arg0: i32, %arg1: i32) -> (i32, i32, i32) {
    %c0_i32 = arith.constant 0 : i32
    %c0_i32_0 = arith.constant 0 : i32
    return %arg0, %c0_i32, %arg1 : i32, i32, i32
  }
  func.func @transform_2(%arg0: i32, %arg1: i32) -> (i32, i32, i32) {
    %c0_i32 = arith.constant 0 : i32
    %c0_i32_0 = arith.constant 0 : i32
    return %arg0, %c0_i32, %arg1 : i32, i32, i32
  }
  func.func @transform_3(%arg0: i32, %arg1: i32) -> (i32, i32, i32, i32) {
    %c0_i32 = arith.constant 0 : i32
    %c0_i32_0 = arith.constant 0 : i32
    %c0_i32_1 = arith.constant 0 : i32
    return %arg0, %c0_i32, %c0_i32_0, %arg1 : i32, i32, i32, i32
  }
}

</mosaic_0001>

<bundles_post_ra>
// kernel: tpu_custom_call.1
= control target key start
LH: loop header
LB: loop body
LE: loop exit
PB: predicated region body
PF: predicated region fallthrough
CT: control target
= control target key end

     0   :  { %s1133_s12 = smov 0   ;;  %s1135_s13 = smov 0   ;;  %s1647_s0 = inlined_call_operand.vmem [shape: f32[2,128,8], index: 0, kind: input, shape index: {}]   ;;  %s1648_s1 = inlined_call_operand.vmem [shape: f32[2,8,128], index: 1, kind: input, shape index: {}]   ;;  %s1649_s2 = inlined_call_operand.vmem [shape: f32[2,3,128], index: 2, kind: input, shape index: {}]   ;;  %s1650_s3 = inlined_call_operand.vmem [shape: f32[2,3,3,128], index: 3, kind: output, shape index: {}]  }
   0x1   :  { %s1137_s14 = smov 0  }
   0x2 LB: > { %s25_s15 = sadd.s32 1, %s1103_s13  ;;  %p1017_p0 = scmp.ge.s32.totalorder %s1107_s14, 1  ;;  %s1107_s14 = sphi %s1137_s14, %s13_s14   ;;  %s1103_s13 = sphi %s1135_s13, %s1690_s13   ;;  %s1099_s12 = sphi %s1133_s12, %s1689_s12  }
   0x3   : > { %p27_p1 = scmp.ge.s32.totalorder %s25_s15, 2  ;;  %p179_p2 = scmp.lt.s32.totalorder %s1107_s14, 3 }
   0x5   : > { %s1692_s15 = smov (%p27_p1, %s25_s15), 0  ;;  %p180_p3 = pnand %p1017_p0, %p179_p2 }
   0x7   : > { %183 = sbr.rel (%p180_p3) target bundleno = 333 (0x14d), region = 32 }
   0xc   : > { %p220_p4 = scmp.lt.s32.totalorder %s1099_s12, 1  ;;  %v1109_v0 = vmov 4   ;;  %vm265_vm0 = vcmask 64512   ;;  %v1110_v18 = vmov 5   ;;  %v1111_v19 = vmov 6  }
   0xd   : > { %1077 = vset.pattern.permute.xlu1 %v1109_v0  ;;  %1076 = vset.pattern.permute.xlu0 %v1109_v0 }
   0xe   : > { %s1694_s12 = smov (!%p220_p4, %s1099_s12), 1  ;;  %1078 = vset.pattern.permute.xlu2 %v1109_v0 }
   0xf   : > { %s1043_s16 = sshll.u32 %s1694_s12, 7  ;;  %s1020_s17 = sshll.u32 %s1694_s12, 3 }
  0x10   : > { %s1158_s20 = scalar_lea.vmem %s1647_s0, %s1043_s16  ;;  %s231_s23 = scalar_lea.vmem %s1648_s1, %s1020_s17 }
  0x11   : > { %v1163_v1 = vld [vmem:[%s231_s23] sm:$0xff]  ;;  %v1166_v2 = vld [vmem:[%s1158_s20 + $0x10] sm:$0xff]  ;;  %v1196_v7 = vld [vmem:[%s1158_s20 + $0x18] sm:$0xff]  ;;  %s1021_s24 = sshll.u32 %s1694_s12, 2  ;;  %s1047_s25 = smul.u32 12, %s1694_s12 }
  0x12   : > { %1657 = vst [vmem:[#allocation2_spill] sm:$0xff] %v1163_v1  ;;  %v1169_v3 = vld [vmem:[%s1158_s20] sm:$0xff]  ;;  %1045 = vmatpush.msra.mxu2 %v1163_v1  ;;  %600 = vperm.xlu1 %1077, %v1166_v2   ;;  %v248_v8 = vld [vmem:[%s1158_s20 + $0x8] sm:$0xff]  ;;  %v254_v12 = vld [vmem:[%s1158_s20 + $0x38] sm:$0xff]  ;;  %s238_s28 = scalar_lea.vmem %s1649_s2, %s1021_s24 }
  0x13   : > { %v1174_v4 = vld [vmem:[%s1158_s20 + $0x40] sm:$0xff]  ;;  %592 = vperm.xlu0 %1076, %v1169_v3   ;;  %1046 = vmatpush.msra.mxu3 %v1163_v1  ;;  %v1200_v9 = vld [vmem:[%s1158_s20 + $0x48] sm:$0xff]  ;;  %v253_v13 = vld [vmem:[%s1158_s20 + $0x30] sm:$0xff]  ;;  %s1574_s4 = scalar_lea.vmem %s1650_s3, %s1047_s25 }
  0x14   : > { %v1177_v5 = vld [vmem:[%s1158_s20 + $0x60] sm:$0xff]  ;;  %1031 = vmatmul.msk.f32.vlgmr.msra.gmra.mxu2 %vm265_vm0, %v1174_v4  ;;  %329 = vmatpush.msra.mxu0 %v1163_v1  ;;  %v252_v10 = vld [vmem:[%s1158_s20 + $0x28] sm:$0xff]  ;;  %v257_v14 = vld [vmem:[%s1158_s20 + $0x50] sm:$0xff] }
  0x15   : > { %v1180_v6 = vld [vmem:[%s1158_s20 + $0x20] sm:$0xff]  ;;  %1035 = vmatmul.msk.f32.vlgmr.msra.gmra.mxu3 %vm265_vm0, %v1177_v5  ;;  %1044 = vmatpush.msra.mxu1 %v1163_v1  ;;  %v1205_v11 = vld [vmem:[%s1158_s20 + $0x68] sm:$0xff]  ;;  %v261_v15 = vld [vmem:[%s1158_s20 + $0x70] sm:$0xff] }
  0x16   : > { %608 = vperm.xlu2 %1078, %v1180_v6   ;;  %1023 = vmatmul.msk.f32.vlgmr.msra.gmra.mxu0 %vm265_vm0, %v1169_v3  ;;  %v258_v16 = vld [vmem:[%s1158_s20 + $0x58] sm:$0xff] }
  0x17   : > { %1027 = vmatmul.msk.f32.vlgmr.msra.gmra.mxu1 %vm265_vm0, %v1180_v6  ;;  %v262_v17 = vld [vmem:[%s1158_s20 + $0x78] sm:$0xff] }
  0x1a   : > { %604 = vperm.xlu1 %1077, %v1196_v7  }
  0x1b   : > { %596 = vperm.xlu0 %1076, %v248_v8  }
  0x1c   : > { %1032 = vmatmul.msk.f32.gmra.mxu2 %vm265_vm0, %v1200_v9 }
  0x1d   : > { %1036 = vmatmul.msk.f32.gmra.mxu3 %vm265_vm0, %v1205_v11 }
  0x1e   : > { %612 = vperm.xlu2 %1078, %v252_v10   ;;  %1024 = vmatmul.msk.f32.gmra.mxu0 %vm265_vm0, %v248_v8 }
  0x1f   : > { %1028 = vmatmul.msk.f32.gmra.mxu1 %vm265_vm0, %v252_v10 }
  0x22   : > { %620 = vperm.xlu1 %1077, %v254_v12  }
  0x23   : > { %616 = vperm.xlu0 %1076, %v253_v13  }
  0x24   : > { %1033 = vmatmul.msk.f32.gmra.mxu2 %vm265_vm0, %v257_v14 }
  0x25   : > { %1037 = vmatmul.msk.f32.gmra.mxu3 %vm265_vm0, %v261_v15 }
  0x26   : > { %624 = vperm.xlu2 %1078, %v1174_v4   ;;  %1025 = vmatmul.msk.f32.gmra.mxu0 %vm265_vm0, %v1166_v2 }
  0x27   : > { %1029 = vmatmul.msk.f32.gmra.mxu1 %vm265_vm0, %v253_v13 }
  0x2a   : > { %632 = vperm.xlu1 %1077, %v257_v14  }
  0x2b   : > { %628 = vperm.xlu0 %1076, %v1200_v9  }
  0x2c   : > { %1034 = vmatmul.msk.f32.gmra.mxu2 %vm265_vm0, %v258_v16 }
  0x2d   : > { %1038 = vmatmul.msk.f32.gmra.mxu3 %vm265_vm0, %v262_v17 }
  0x2e   : > { %636 = vperm.xlu2 %1078, %v258_v16   ;;  %1026 = vmatmul.msk.f32.gmra.mxu0 %vm265_vm0, %v1196_v7 }
  0x2f   : > { %1030 = vmatmul.msk.f32.gmra.mxu1 %vm265_vm0, %v254_v12 }
  0x32   : > { %644 = vperm.xlu1 %1077, %v1205_v11  }
  0x33   : > { %640 = vperm.xlu0 %1076, %v1177_v5  }
  0x36   : > { %648 = vperm.xlu2 %1078, %v261_v15  }
  0x3a   : > { %1079 = vset.pattern.permute.xlu1 %v1110_v18 }
  0x3b   : > { %652 = vperm.xlu0 %1076, %v262_v17   ;;  %694 = vperm.xlu1 %1079, %v1169_v3  }
  0x3e   : > { %1080 = vset.pattern.permute.xlu2 %v1110_v18 }
  0x3f   : > { %698 = vperm.xlu2 %1080, %v248_v8  }
  0x43   : > { %1081 = vset.pattern.permute.xlu0 %v1110_v18  ;;  %706 = vperm.xlu1 %1079, %v1196_v7  }
  0x44   : > { %702 = vperm.xlu0 %1081, %v1166_v2  }
  0x47   : > { %710 = vperm.xlu2 %1080, %v1180_v6  }
  0x4b   : > { %714 = vperm.xlu1 %1079, %v252_v10  }
  0x4c   : > { %722 = vperm.xlu0 %1081, %v254_v12  }
  0x4f   : > { %718 = vperm.xlu2 %1080, %v253_v13  }
  0x53   : > { %726 = vperm.xlu1 %1079, %v1174_v4  }
  0x54   : > { %734 = vperm.xlu0 %1081, %v257_v14  }
  0x57   : > { %730 = vperm.xlu2 %1080, %v1200_v9  }
  0x5b   : > { %738 = vperm.xlu1 %1079, %v258_v16  }
  0x5c   : > { %746 = vperm.xlu0 %1081, %v1205_v11  }
  0x5f   : > { %742 = vperm.xlu2 %1080, %v1177_v5  }
  0x63   : > { %750 = vperm.xlu1 %1079, %v261_v15  }
  0x64   : > { %1082 = vset.pattern.permute.xlu0 %v1111_v19 }
  0x65   : > { %796 = vperm.xlu0 %1082, %v1169_v3  }
  0x67   : > { %754 = vperm.xlu2 %1080, %v262_v17  }
  0x6b   : > { %1083 = vset.pattern.permute.xlu1 %v1111_v19 }
  0x6c   : > { %800 = vperm.xlu1 %1083, %v248_v8  }
  0x6d   : > { %816 = vperm.xlu0 %1082, %v252_v10  }
  0x6f   : > { %1084 = vset.pattern.permute.xlu2 %v1111_v19 }
  0x70   : > { %804 = vperm.xlu2 %1084, %v1166_v2   ;;  %v1271_v31 = vpop.permute.xlu2 %608 }
  0x71   : > { %1659 = vst [vmem:[#allocation4_spill] sm:$0xff] %v1271_v31 }
  0x74   : > { %808 = vperm.xlu1 %1083, %v1196_v7  }
  0x75   : > { %828 = vperm.xlu0 %1082, %v1174_v4  }
  0x78   : > { %812 = vperm.xlu2 %1084, %v1180_v6   ;;  %v1296_v45 = vpop.permute.xlu2 %612 }
  0x7c   : > { %820 = vperm.xlu1 %1083, %v253_v13  }
  0x7d   : > { %840 = vperm.xlu0 %1082, %v258_v16  }
  0x80   : > { %824 = vperm.xlu2 %1084, %v254_v12   ;;  %v1311_v59 = vpop.permute.xlu2 %624 }
  0x81   : > { %1664 = vst [vmem:[#allocation9_spill] sm:$0xff] %v1311_v59 }
  0x84   : > { %832 = vperm.xlu1 %1083, %v1200_v9   ;;  %v1257_v24 = vpop.permute.xlu1 %600 }
  0x85   : > { %852 = vperm.xlu0 %1082, %v261_v15   ;;  %v1300_v47 = vpop.permute.xlu0 %592 }
  0x88   : > { %836 = vperm.xlu2 %1084, %v257_v14   ;;  %v1317_v4 = vpop.permute.xlu2 %636 }
  0x89   : > { %1666 = vst [vmem:[#allocation11_spill] sm:$0xff] %v1317_v4 }
  0x8c   : > { %844 = vperm.xlu1 %1083, %v1177_v5   ;;  %v1267_v29 = vpop.permute.xlu1 %604 }
  0x8d   : > { %v1313_v60 = vpop.permute.xlu0 %596 }
  0x90   : > { %848 = vperm.xlu2 %1084, %v1205_v11   ;;  %v1347_v19 = vpop.permute.xlu2 %648 }
  0x91   : > { %1668 = vst [vmem:[#allocation13_spill] sm:$0xff] %v1347_v19 }
  0x93   : > { %v1249_v20 = vpop.f32.mrf.mxu0 }
  0x94   : > { %v1251_v21 = vpop.f32.mrf.mxu1  ;;  %856 = vperm.xlu1 %1083, %v262_v17   ;;  %v1290_v41 = vpop.permute.xlu1 %620 }
  0x95   : > { %v379_v36 = vmax.f32 %v1249_v20, %v1251_v21  ;;  %v1319_v5 = vpop.permute.xlu0 %616 }
  0x97   : > { %v1253_v22 = vpop.f32.mrf.mxu2 }
  0x98   : > { %v1255_v23 = vpop.f32.mrf.mxu3  ;;  %v383_v42 = vmax.f32 %v379_v36, %v1253_v22 }
  0x9a   : > { %v387_v51 = vmax.f32 %v383_v42, %v1255_v23 }
  0x9b   : > { %v1259_v25 = vpop.f32.mrf.mxu0 }
  0x9c   : > { %v1261_v26 = vpop.f32.mrf.mxu1  ;;  %v1309_v57 = vpop.permute.xlu1 %632 }
  0x9d   : > { %v380_v34 = vmax.f32 %v1259_v25, %v1261_v26  ;;  %1663 = vst [vmem:[#allocation8_spill] sm:$0xff] %v1309_v57  ;;  %v1361_v42 = vpop.permute.xlu0 %628 }
  0x9f   : > { %v1263_v27 = vpop.f32.mrf.mxu2 }
  0xa0   : > { %v1265_v28 = vpop.f32.mrf.mxu3  ;;  %v384_v38 = vmax.f32 %v380_v34, %v1263_v27 }
  0xa1   : > { %1658 = vst [vmem:[#allocation3_spill] sm:$0xff] %v1265_v28 }
  0xa2   : > { %v388_v48 = vmax.f32 %v384_v38, %v1265_v28 }
  0xa3   : > { %v1269_v30 = vpop.f32.mrf.mxu0 }
  0xa4   : > { %v1273_v32 = vpop.f32.mrf.mxu1  ;;  %v391_v54 = vmax.f32 %v387_v51, %v388_v48  ;;  %v1315_v2 = vpop.permute.xlu1 %644 }
  0xa5   : > { %v381_v37 = vmax.f32 %v1269_v30, %v1273_v32  ;;  %1665 = vst [vmem:[#allocation10_spill] sm:$0xff] %v1315_v2 }
  0xa7   : > { %v1275_v33 = vpop.f32.mrf.mxu2 }
  0xa8   : > { %1660 = vst [vmem:[#allocation5_spill] sm:$0xff] %v1275_v33  ;;  %v1279_v35 = vpop.f32.mrf.mxu3  ;;  %v385_v43 = vmax.f32 %v381_v37, %v1275_v33 }
  0xa9   : > { %1661 = vst [vmem:[#allocation6_spill] sm:$0xff] %v1279_v35 }
  0xaa   : > { %v389_v52 = vmax.f32 %v385_v43, %v1279_v35 }
  0xab   : > { %v1286_v39 = vpop.f32.mrf.mxu0 }
  0xac   : > { %v1288_v40 = vpop.f32.mrf.mxu1 }
  0xad   : > { %v382_v44 = vmax.f32 %v1286_v39, %v1288_v40  ;;  %v1345_v14 = vpop.permute.xlu1 %694 }
  0xae   : > { %1667 = vst [vmem:[#allocation12_spill] sm:$0xff] %v1345_v14 }
  0xaf   : > { %v1298_v46 = vpop.f32.mrf.mxu2 }
  0xb0   : > { %1662 = vst [vmem:[#allocation7_spill] sm:$0xff] %v1298_v46  ;;  %v386_v49 = vmax.f32 %v382_v44, %v1298_v46  ;;  %v1304_v50 = vpop.f32.mrf.mxu3 }
  0xb2   : > { %v390_v53 = vmax.f32 %v386_v49, %v1304_v50 }
  0xb4   : > { %v392_v55 = vmax.f32 %v389_v52, %v390_v53 }
  0xb6   : > { %v393_v56 = vmax.f32 %v391_v54, %v392_v55 }
  0xb8   : > { %v394_v58 = vrot.slane %v393_v56, 4 }
  0xba   : > { %v395_v61 = vmax.f32 %v393_v56, %v394_v58 }
  0xbc   : > { %v396_v62 = vrot.slane %v395_v61, 2 }
  0xbe   : > { %v397_v63 = vmax.f32 %v395_v61, %v396_v62 }
  0xc0   : > { %v398_v0 = vrot.slane %v397_v63, 1 }
  0xc2   : > { %v399_v3 = vmax.f32 %v397_v63, %v398_v0 }
  0xc4   : > { %vm400_vm1 = vcmp.ge.f32.partialorder %v1249_v20, %v399_v3  ;;  %vm401_vm2 = vcmp.ge.f32.partialorder %v1259_v25, %v399_v3  ;;  %vm402_vm3 = vcmp.ge.f32.partialorder %v1269_v30, %v399_v3  ;;  %vm403_vm4 = vcmp.ge.f32.partialorder %v1286_v39, %v399_v3 }
  0xc5   : > { %vm404_vm5 = vcmp.ge.f32.partialorder %v1251_v21, %v399_v3  ;;  %vm405_vm6 = vcmp.ge.f32.partialorder %v1261_v26, %v399_v3  ;;  %vm406_vm7 = vcmp.ge.f32.partialorder %v1273_v32, %v399_v3  ;;  %vm407_vm8 = vcmp.ge.f32.partialorder %v1288_v40, %v399_v3 }
  0xc6   : > { %v416_v6 = vsel %vm400_vm1, -inf, %v1249_v20  ;;  %v417_v7 = vsel %vm401_vm2, -inf, %v1259_v25  ;;  %v418_v8 = vsel %vm402_vm3, -inf, %v1269_v30  ;;  %v419_v9 = vsel %vm403_vm4, -inf, %v1286_v39 }
  0xc7   : > { %v420_v10 = vsel %vm404_vm5, -inf, %v1251_v21  ;;  %v421_v11 = vsel %vm405_vm6, -inf, %v1261_v26  ;;  %v422_v12 = vsel %vm406_vm7, -inf, %v1273_v32  ;;  %v423_v13 = vsel %vm407_vm8, -inf, %v1288_v40 }
  0xc8   : > { %vm408_vm9 = vcmp.ge.f32.partialorder %v1253_v22, %v399_v3  ;;  %vm409_vm10 = vcmp.ge.f32.partialorder %v1263_v27, %v399_v3  ;;  %vm410_vm11 = vcmp.ge.f32.partialorder %v1275_v33, %v399_v3  ;;  %vm411_vm12 = vcmp.ge.f32.partialorder %v1298_v46, %v399_v3 }
  0xc9   : > { %vm412_vm13 = vcmp.ge.f32.partialorder %v1255_v23, %v399_v3  ;;  %vm413_vm14 = vcmp.ge.f32.partialorder %v1265_v28, %v399_v3  ;;  %vm414_vm15 = vcmp.ge.f32.partialorder %v1279_v35, %v399_v3  ;;  %vm415_vm0 = vcmp.ge.f32.partialorder %v1304_v50, %v399_v3 }
  0xca   : > { %v432_v15 = vmax.f32 %v416_v6, %v420_v10  ;;  %v433_v16 = vmax.f32 %v417_v7, %v421_v11  ;;  %v434_v17 = vmax.f32 %v418_v8, %v422_v12  ;;  %v435_v18 = vmax.f32 %v419_v9, %v423_v13 }
  0xcb   : > { %v1350_v34 = vsel %vm408_vm9, -inf, %v1253_v22  ;;  %v1353_v36 = vsel %vm409_vm10, -inf, %v1263_v27  ;;  %v1356_v37 = vsel %vm410_vm11, -inf, %v1275_v33  ;;  %v1359_v38 = vsel %vm411_vm12, -inf, %v1298_v46 }
  0xcc   : > { %v436_v43 = vmax.f32 %v432_v15, %v1350_v34  ;;  %v437_v44 = vmax.f32 %v433_v16, %v1353_v36  ;;  %v438_v48 = vmax.f32 %v434_v17, %v1356_v37  ;;  %v439_v49 = vmax.f32 %v435_v18, %v1359_v38  ;;  %v1379_v16 = vpop.permute.xlu1 %706  ;;  %v1381_v17 = vpop.permute.xlu2 %698 }
  0xcd   : > { %v428_v51 = vsel %vm412_vm13, -inf, %v1255_v23  ;;  %v429_v52 = vsel %vm413_vm14, -inf, %v1265_v28  ;;  %v430_v53 = vsel %vm414_vm15, -inf, %v1279_v35  ;;  %v431_v54 = vsel %vm415_vm0, -inf, %v1304_v50  ;;  %v1383_v18 = vpop.permute.xlu0 %640 }
  0xce   : > { %v440_v55 = vmax.f32 %v436_v43, %v428_v51  ;;  %v441_v56 = vmax.f32 %v437_v44, %v429_v52  ;;  %v442_v58 = vmax.f32 %v438_v48, %v430_v53  ;;  %v443_v61 = vmax.f32 %v439_v49, %v431_v54 }
  0xd0   : > { %v444_v62 = vmax.f32 %v440_v55, %v441_v56  ;;  %v445_v63 = vmax.f32 %v442_v58, %v443_v61 }
  0xd2   : > { %v446_v0 = vmax.f32 %v444_v62, %v445_v63 }
  0xd4   : > { %v447_v15 = vrot.slane %v446_v0, 4  ;;  %v1385_v4 = vpop.permute.xlu1 %714  ;;  %v1387_v43 = vpop.permute.xlu2 %710 }
  0xd5   : > { %1669 = vst [vmem:[#allocation14_spill] sm:$0xff] %v1387_v43  ;;  %v1389_v44 = vpop.permute.xlu0 %652 }
  0xd6   : > { %v448_v1 = vmax.f32 %v446_v0, %v447_v15 }
  0xd8   : > { %v449_v19 = vrot.slane %v448_v1, 2 }
  0xda   : > { %v450_v35 = vmax.f32 %v448_v1, %v449_v19 }
  0xdc   : > { %v451_v2 = vrot.slane %v450_v35, 1 }
  0xde   : > { %v452_v3 = vmax.f32 %v450_v35, %v451_v2 }
  0xe0   : > { %vm453_vm1 = vcmp.ge.f32.partialorder %v416_v6, %v452_v3  ;;  %vm454_vm2 = vcmp.ge.f32.partialorder %v417_v7, %v452_v3  ;;  %vm455_vm3 = vcmp.ge.f32.partialorder %v418_v8, %v452_v3  ;;  %vm456_vm4 = vcmp.ge.f32.partialorder %v419_v9, %v452_v3 }
  0xe1   : > { %vm457_vm5 = vcmp.ge.f32.partialorder %v420_v10, %v452_v3  ;;  %vm458_vm6 = vcmp.ge.f32.partialorder %v421_v11, %v452_v3  ;;  %vm459_vm7 = vcmp.ge.f32.partialorder %v422_v12, %v452_v3  ;;  %vm460_vm8 = vcmp.ge.f32.partialorder %v423_v13, %v452_v3 }
  0xe2   : > { %v469_v48 = vsel %vm453_vm1, -inf, %v416_v6  ;;  %v470_v49 = vsel %vm454_vm2, -inf, %v417_v7  ;;  %v471_v55 = vsel %vm455_vm3, -inf, %v418_v8  ;;  %v472_v1 = vsel %vm456_vm4, -inf, %v419_v9 }
  0xe3   : > { %v473_v19 = vsel %vm457_vm5, -inf, %v420_v10  ;;  %v474_v35 = vsel %vm458_vm6, -inf, %v421_v11  ;;  %v475_v2 = vsel %vm459_vm7, -inf, %v422_v12  ;;  %v476_v56 = vsel %vm460_vm8, -inf, %v423_v13  ;;  %v1395_v10 = vpop.permute.xlu0 %702  ;;  %v1397_v11 = vpop.permute.xlu1 %726 }
  0xe4   : > { %vm461_vm9 = vcmp.ge.f32.partialorder %v1350_v34, %v452_v3  ;;  %vm462_vm10 = vcmp.ge.f32.partialorder %v1353_v36, %v452_v3  ;;  %vm463_vm11 = vcmp.ge.f32.partialorder %v1356_v37, %v452_v3  ;;  %vm464_vm12 = vcmp.ge.f32.partialorder %v1359_v38, %v452_v3  ;;  %1670 = vst [vmem:[#allocation15_spill] sm:$0xff] %v1397_v11  ;;  %v1399_v12 = vpop.permute.xlu2 %718 }
  0xe5   : > { %vm465_vm13 = vcmp.ge.f32.partialorder %v428_v51, %v452_v3  ;;  %vm466_vm14 = vcmp.ge.f32.partialorder %v429_v52, %v452_v3  ;;  %vm467_vm15 = vcmp.ge.f32.partialorder %v430_v53, %v452_v3  ;;  %vm468_vm0 = vcmp.ge.f32.partialorder %v431_v54, %v452_v3 }
  0xe6   : > { %v485_v6 = vmax.f32 %v469_v48, %v473_v19  ;;  %v486_v7 = vmax.f32 %v470_v49, %v474_v35  ;;  %v487_v8 = vmax.f32 %v471_v55, %v475_v2  ;;  %v488_v9 = vmax.f32 %v472_v1, %v476_v56 }
  0xe7   : > { %v477_v13 = vsel %vm461_vm9, -inf, %v1350_v34  ;;  %v478_v58 = vsel %vm462_vm10, -inf, %v1353_v36  ;;  %v479_v61 = vsel %vm463_vm11, -inf, %v1356_v37  ;;  %v480_v62 = vsel %vm464_vm12, -inf, %v1359_v38 }
  0xe8   : > { %v489_v63 = vmax.f32 %v485_v6, %v477_v13  ;;  %v490_v0 = vmax.f32 %v486_v7, %v478_v58  ;;  %v491_v15 = vmax.f32 %v487_v8, %v479_v61  ;;  %v492_v57 = vmax.f32 %v488_v9, %v480_v62 }
  0xe9   : > { %v481_v28 = vsel %vm465_vm13, -inf, %v428_v51  ;;  %v482_v46 = vsel %vm466_vm14, -inf, %v429_v52  ;;  %v483_v33 = vsel %vm467_vm15, -inf, %v430_v53  ;;  %v484_v11 = vsel %vm468_vm0, -inf, %v431_v54 }
  0xea   : > { %v493_v43 = vmax.f32 %v489_v63, %v481_v28  ;;  %v494_v34 = vmax.f32 %v490_v0, %v482_v46  ;;  %v495_v14 = vmax.f32 %v491_v15, %v483_v33  ;;  %v496_v36 = vmax.f32 %v492_v57, %v484_v11 }
  0xeb   : > { %v1409_v6 = vpop.permute.xlu0 %722  ;;  %v1411_v7 = vpop.permute.xlu1 %738 }
  0xec   : > { %v497_v59 = vmax.f32 %v493_v43, %v494_v34  ;;  %v498_v37 = vmax.f32 %v495_v14, %v496_v36  ;;  %1671 = vst [vmem:[#allocation16_spill] sm:$0xff] %v1411_v7  ;;  %v1413_v8 = vpop.permute.xlu2 %730 }
  0xee   : > { %v499_v31 = vmax.f32 %v497_v59, %v498_v37 }
  0xf0   : > { %v500_v38 = vrot.slane %v499_v31, 4 }
  0xf2   : > { %v501_v51 = vmax.f32 %v499_v31, %v500_v38 }
  0xf3   : > { %v1415_v54 = vpop.permute.xlu0 %734  ;;  %v1417_v63 = vpop.permute.xlu1 %750 }
  0xf4   : > { %v502_v52 = vrot.slane %v501_v51, 2  ;;  %1672 = vst [vmem:[#allocation17_spill] sm:$0xff] %v1417_v63  ;;  %v1419_v57 = vpop.permute.xlu2 %742 }
  0xf6   : > { %v503_v9 = vmax.f32 %v501_v51, %v502_v52 }
  0xf8   : > { %v504_v53 = vrot.slane %v503_v9, 1 }
  0xfa   : > { %v505_v3 = vmax.f32 %v503_v9, %v504_v53 }
  0xfc   : > { %vm506_vm1 = vcmp.ge.f32.partialorder %v469_v48, %v505_v3  ;;  %vm507_vm2 = vcmp.ge.f32.partialorder %v470_v49, %v505_v3  ;;  %vm508_vm3 = vcmp.ge.f32.partialorder %v471_v55, %v505_v3  ;;  %vm509_vm4 = vcmp.ge.f32.partialorder %v472_v1, %v505_v3 }
  0xfd   : > { %vm510_vm5 = vcmp.ge.f32.partialorder %v473_v19, %v505_v3  ;;  %vm511_vm6 = vcmp.ge.f32.partialorder %v474_v35, %v505_v3  ;;  %vm512_vm7 = vcmp.ge.f32.partialorder %v475_v2, %v505_v3  ;;  %vm513_vm8 = vcmp.ge.f32.partialorder %v476_v56, %v505_v3 }
  0xfe   : > { %v522_v59 = vsel %vm506_vm1, -inf, %v469_v48  ;;  %v523_v31 = vsel %vm507_vm2, -inf, %v470_v49  ;;  %v524_v14 = vsel %vm508_vm3, -inf, %v471_v55  ;;  %v525_v43 = vsel %vm509_vm4, -inf, %v472_v1  ;;  %v1421_v48 = vpop.permute.xlu0 %746  ;;  %v1423_v49 = vpop.permute.xlu1 %800 }
  0xff   : > { %v526_v0 = vsel %vm510_vm5, -inf, %v473_v19  ;;  %v527_v15 = vsel %vm511_vm6, -inf, %v474_v35  ;;  %v528_v34 = vsel %vm512_vm7, -inf, %v475_v2  ;;  %v529_v36 = vsel %vm513_vm8, -inf, %v476_v56  ;;  %v1425_v2 = vpop.permute.xlu2 %754 }
 0x100   : > { %vm514_vm9 = vcmp.ge.f32.partialorder %v477_v13, %v505_v3  ;;  %vm515_vm10 = vcmp.ge.f32.partialorder %v478_v58, %v505_v3  ;;  %vm516_vm11 = vcmp.ge.f32.partialorder %v479_v61, %v505_v3  ;;  %vm517_vm12 = vcmp.ge.f32.partialorder %v480_v62, %v505_v3 }
 0x101   : > { %vm518_vm13 = vcmp.ge.f32.partialorder %v481_v28, %v505_v3  ;;  %vm519_vm14 = vcmp.ge.f32.partialorder %v482_v46, %v505_v3  ;;  %vm520_vm15 = vcmp.ge.f32.partialorder %v483_v33, %v505_v3  ;;  %vm521_vm0 = vcmp.ge.f32.partialorder %v484_v11, %v505_v3 }
 0x102   : > { %v538_v37 = vmax.f32 %v522_v59, %v526_v0  ;;  %v539_v38 = vmax.f32 %v523_v31, %v527_v15  ;;  %v540_v51 = vmax.f32 %v524_v14, %v528_v34  ;;  %v541_v52 = vmax.f32 %v525_v43, %v529_v36 }
 0x103   : > { %v530_v55 = vsel %vm514_vm9, -inf, %v477_v13  ;;  %v531_v1 = vsel %vm515_vm10, -inf, %v478_v58  ;;  %v532_v19 = vsel %vm516_vm11, -inf, %v479_v61  ;;  %v533_v35 = vsel %vm517_vm12, -inf, %v480_v62 }
 0x104   : > { %v542_v56 = vmax.f32 %v538_v37, %v530_v55  ;;  %v543_v9 = vmax.f32 %v539_v38, %v531_v1  ;;  %v544_v53 = vmax.f32 %v540_v51, %v532_v19  ;;  %v545_v63 = vmax.f32 %v541_v52, %v533_v35 }
 0x105   : > { %v534_v7 = vsel %vm518_vm13, -inf, %v481_v28  ;;  %v535_v59 = vsel %vm519_vm14, -inf, %v482_v46  ;;  %v536_v31 = vsel %vm520_vm15, -inf, %v483_v33  ;;  %v537_v14 = vsel %vm521_vm0, -inf, %v484_v11 }
 0x106   : > { %v546_v43 = vmax.f32 %v542_v56, %v534_v7  ;;  %v547_v0 = vmax.f32 %v543_v9, %v535_v59  ;;  %v548_v13 = vmax.f32 %v544_v53, %v536_v31  ;;  %v549_v58 = vmax.f32 %v545_v63, %v537_v14  ;;  %v1433_v37 = vpop.permute.xlu0 %796  ;;  %v1435_v38 = vpop.permute.xlu1 %808 }
 0x107   : > { %v1431_v34 = vpop.permute.xlu2 %804  ;;  %v1112_v52 = vmov -inf  }
 0x108   : > { %v550_v61 = vmax.f32 %v546_v43, %v547_v0  ;;  %v551_v62 = vmax.f32 %v548_v13, %v549_v58  ;;  %v1674_v13 = vld [vmem:[#allocation9_spill] sm:$0xff] }
 0x10a   : > { %v552_v15 = vmax.f32 %v550_v61, %v551_v62  ;;  %v1675_v61 = vld [vmem:[#allocation12_spill] sm:$0xff] }
 0x10c   : > { %v553_v36 = vrot.slane %v552_v15, 4 }
 0x10e   : > { %v554_v28 = vmax.f32 %v552_v15, %v553_v36  ;;  %v1441_v7 = vpop.permute.xlu0 %816  ;;  %v1443_v63 = vpop.permute.xlu1 %820  ;;  %v264_v15 = vld [vmem:[%s238_s28] sm:$0x7] }
 0x10f   : > { %v1437_v3 = vpop.permute.xlu2 %812  ;;  %v1676_v36 = vld [vmem:[#allocation14_spill] sm:$0xff]  ;;  %901 = vst [vmem:[%s1574_s4] sm:$0x7] %v264_v15 }
 0x110   : > { %v555_v46 = vrot.slane %v554_v28, 2  ;;  %1040 = vst [vmem:[%s1574_s4 + $0x8] sm:$0x7] %v264_v15 }
 0x112   : > { %v556_v51 = vmax.f32 %v554_v28, %v555_v46  ;;  %v1677_v46 = vld [vmem:[#allocation15_spill] sm:$0xff] }
 0x114   : > { %v557_v33 = vrot.slane %v556_v51, 1 }
 0x116   : > { %v1439_v11 = vmax.f32 %v556_v51, %v557_v33  ;;  %v1678_v33 = vld [vmem:[#allocation5_spill] sm:$0xff] }
 0x118   : > { %vm568_vm1 = vcmp.ge.f32.partialorder %v1263_v27, %v1439_v11  ;;  %vm562_vm2 = vcmp.ge.f32.partialorder %v1286_v39, %v1439_v11  ;;  %vm561_vm3 = vcmp.ge.f32.partialorder %v1269_v30, %v1439_v11  ;;  %vm565_vm4 = vcmp.ge.f32.partialorder %v1273_v32, %v1439_v11 }
 0x119   : > { %v1452_v55 = vsel %vm568_vm1, 0.0, %v1112_v52  ;;  %v1455_v1 = vsel %vm562_vm2, 0.0, %v1112_v52  ;;  %v1460_v19 = vsel %vm561_vm3, 0.0, %v1112_v52  ;;  %vm574_vm5 = vcmp.ge.f32.partialorder %v1304_v50, %v1439_v11 }
 0x11a   : > { %v1466_v27 = vadd.f32 %v1361_v42, %v1452_v55  ;;  %v1470_v30 = vadd.f32 %v1413_v8, %v1452_v55  ;;  %v1474_v39 = vadd.f32 %v1267_v29, %v1455_v1  ;;  %v1478_v32 = vadd.f32 %v1379_v16, %v1455_v1 }
 0x11b   : > { %v1481_v35 = vsel %vm565_vm4, 0.0, %v1112_v52  ;;  %v1485_v42 = vadd.f32 %v1257_v24, %v1460_v19  ;;  %vm571_vm6 = vcmp.ge.f32.partialorder %v1255_v23, %v1439_v11  ;;  %v1495_v16 = vadd.f32 %v1395_v10, %v1460_v19 }
 0x11c   : > { %v1491_v29 = vadd.f32 %v1319_v5, %v1481_v35  ;;  %v1498_v8 = vsel %vm571_vm6, 0.0, %v1112_v52  ;;  %vm560_vm7 = vcmp.ge.f32.partialorder %v1259_v25, %v1439_v11  ;;  %v1504_v24 = vadd.f32 %v1399_v12, %v1481_v35 }
 0x11d   : > { %v1508_v23 = vadd.f32 %v1383_v18, %v1498_v8  ;;  %vm564_vm8 = vcmp.ge.f32.partialorder %v1261_v26, %v1439_v11  ;;  %v1513_v5 = vsel %vm560_vm7, 0.0, %v1112_v52  ;;  %v1519_v25 = vadd.f32 %v1419_v57, %v1498_v8  ;;  %v1536_v57 = vpop.permute.xlu2 %824 }
 0x11e   : > { %v673_v10 = vmax.f32 %v1485_v42, %v1491_v29  ;;  %v1522_v12 = vsel %vm564_vm8, 0.0, %v1112_v52  ;;  %v656_v18 = vadd.f32 %v1313_v60, %v1513_v5  ;;  %v758_v56 = vadd.f32 %v1381_v17, %v1513_v5  ;;  %v1680_v29 = vld [vmem:[#allocation3_spill] sm:$0xff] }
 0x11f   : > { %v660_v26 = vadd.f32 %v1296_v45, %v1522_v12  ;;  %v762_v9 = vadd.f32 %v1385_v4, %v1522_v12  ;;  %vm566_vm9 = vcmp.ge.f32.partialorder %v1288_v40, %v1439_v11  ;;  %v1545_v60 = vsel %vm574_vm5, 0.0, %v1112_v52  ;;  %v1551_v45 = vpop.permute.xlu0 %828  ;;  %v1553_v40 = vpop.permute.xlu1 %832 }
 0x120   : > { %v1539_v53 = vsel %vm566_vm9, 0.0, %v1112_v52  ;;  %vm559_vm10 = vcmp.ge.f32.partialorder %v1249_v20, %v1439_v11  ;;  %vm563_vm11 = vcmp.ge.f32.partialorder %v1251_v21, %v1439_v11  ;;  %v775_v4 = vmax.f32 %v1495_v16, %v1504_v24  ;;  %v1681_v24 = vld [vmem:[#allocation8_spill] sm:$0xff] }
 0x121   : > { %v672_v17 = vmax.f32 %v656_v18, %v660_v26  ;;  %v662_v59 = vadd.f32 %v1290_v41, %v1539_v53  ;;  %v764_v50 = vadd.f32 %v1409_v6, %v1539_v53  ;;  %v774_v20 = vmax.f32 %v758_v56, %v762_v9  ;;  %v1682_v56 = vld [vmem:[#allocation11_spill] sm:$0xff] }
 0x122   : > { %v1566_v21 = vadd.f32 %v1389_v44, %v1545_v60  ;;  %vm567_vm12 = vcmp.ge.f32.partialorder %v1253_v22, %v1439_v11  ;;  %v575_v31 = vsel %vm559_vm10, 0.0, %v1112_v52  ;;  %v579_v14 = vsel %vm563_vm11, 0.0, %v1112_v52  ;;  %v1673_v22 = vld [vmem:[#allocation4_spill] sm:$0xff] }
 0x123   : > { %v674_v41 = vmax.f32 %v1474_v39, %v662_v59  ;;  %v776_v6 = vmax.f32 %v1478_v32, %v764_v50  ;;  %v583_v44 = vsel %vm567_vm12, 0.0, %v1112_v52  ;;  %v655_v43 = vadd.f32 %v1300_v47, %v575_v31  ;;  %v1679_v39 = vld [vmem:[#allocation7_spill] sm:$0xff]  ;;  %v1683_v50 = vld [vmem:[#allocation16_spill] sm:$0xff] }
 0x124   : > { %v659_v0 = vadd.f32 %v1673_v22, %v579_v14  ;;  %v663_v58 = vadd.f32 %v1674_v13, %v583_v44  ;;  %v757_v62 = vadd.f32 %v1675_v61, %v575_v31  ;;  %v761_v28 = vadd.f32 %v1676_v36, %v579_v14 }
 0x125   : > { %v765_v51 = vadd.f32 %v1677_v46, %v583_v44  ;;  %vm569_vm13 = vcmp.ge.f32.partialorder %v1678_v33, %v1439_v11  ;;  %vm570_vm14 = vcmp.ge.f32.partialorder %v1679_v39, %v1439_v11  ;;  %vm572_vm15 = vcmp.ge.f32.partialorder %v1680_v29, %v1439_v11  ;;  %v1684_v33 = vld [vmem:[#allocation10_spill] sm:$0xff] }
 0x126   : > { %v671_v32 = vmax.f32 %v655_v43, %v659_v0  ;;  %v585_v47 = vsel %vm569_vm13, 0.0, %v1112_v52  ;;  %v586_v42 = vsel %vm570_vm14, 0.0, %v1112_v52  ;;  %v773_v16 = vmax.f32 %v757_v62, %v761_v28  ;;  %v837_v62 = vpop.permute.xlu2 %836 }
 0x127   : > { %v665_v18 = vadd.f32 %v1681_v24, %v585_v47  ;;  %v767_v26 = vadd.f32 %v1415_v54, %v585_v47  ;;  %v666_v9 = vadd.f32 %v1682_v56, %v586_v42  ;;  %v768_v22 = vadd.f32 %v1683_v50, %v586_v42 }
 0x128   : > { %v675_v59 = vmax.f32 %v671_v32, %v663_v58  ;;  %v588_v43 = vsel %vm572_vm15, 0.0, %v1112_v52  ;;  %v676_v0 = vmax.f32 %v672_v17, %v1466_v27  ;;  %v772_v13 = vadd.f32 %v1425_v2, %v1545_v60  ;;  %v841_v58 = vpop.permute.xlu0 %840  ;;  %v845_v32 = vpop.permute.xlu1 %844 }
 0x129   : > { %v777_v61 = vmax.f32 %v773_v16, %v765_v51  ;;  %v677_v36 = vmax.f32 %v673_v10, %v665_v18  ;;  %v678_v15 = vmax.f32 %v674_v41, %v666_v9  ;;  %v779_v46 = vmax.f32 %v775_v4, %v767_v26  ;;  %v1686_v51 = vld [vmem:[#allocation13_spill] sm:$0xff] }
 0x12a   : > { %v679_v28 = vmax.f32 %v675_v59, %v1508_v23  ;;  %v780_v54 = vmax.f32 %v776_v6, %v768_v22  ;;  %v668_v39 = vadd.f32 %v1684_v33, %v588_v43  ;;  %v770_v27 = vadd.f32 %v1421_v48, %v588_v43  ;;  %v1685_v23 = vld [vmem:[#allocation6_spill] sm:$0xff] }
 0x12b   : > { %v781_v29 = vmax.f32 %v777_v61, %v1519_v25  ;;  %v682_v24 = vmax.f32 %v678_v15, %v1566_v21  ;;  %v778_v2 = vmax.f32 %v774_v20, %v1470_v30  ;;  %v861_v10 = vadd.f32 %v1431_v34, %v1460_v19  ;;  %v1687_v20 = vld [vmem:[#allocation17_spill] sm:$0xff] }
 0x12c   : > { %v680_v17 = vmax.f32 %v676_v0, %v668_v39  ;;  %vm573_vm0 = vcmp.ge.f32.partialorder %v1685_v23, %v1439_v11  ;;  %v859_v4 = vadd.f32 %v1433_v37, %v575_v31  ;;  %v863_v25 = vadd.f32 %v1437_v3, %v579_v14  ;;  %v1688_v23 = vld [vmem:[#allocation2_spill] sm:$0xff] }
 0x12d   : > { %v782_v41 = vmax.f32 %v778_v2, %v770_v27  ;;  %v589_v6 = vsel %vm573_vm0, 0.0, %v1112_v52  ;;  %v860_v21 = vadd.f32 %v1423_v49, %v1513_v5  ;;  %v784_v48 = vmax.f32 %v780_v54, %v772_v13 }
 0x12e   : > { %v669_v30 = vadd.f32 %v1686_v51, %v589_v6  ;;  %v771_v16 = vadd.f32 %v1687_v20, %v589_v6  ;;  %v864_v34 = vadd.f32 %v1441_v7, %v1522_v12  ;;  %v875_v11 = vmax.f32 %v859_v4, %v863_v25 }
 0x12f   : > { %v785_v19 = vmax.f32 %v781_v29, %v782_v41  ;;  %v866_v37 = vadd.f32 %v1536_v57, %v1539_v53  ;;  %v862_v52 = vadd.f32 %v1435_v38, %v1455_v1  ;;  %v683_v3 = vmax.f32 %v679_v28, %v680_v17  ;;  %v849_v53 = vpop.permute.xlu2 %848 }
 0x130   : > { %v681_v31 = vmax.f32 %v677_v36, %v669_v30  ;;  %v783_v14 = vmax.f32 %v779_v46, %v771_v16  ;;  %v867_v49 = vadd.f32 %v1551_v45, %v583_v44  ;;  %v876_v5 = vmax.f32 %v860_v21, %v864_v34  ;;  %v853_v45 = vpop.permute.xlu0 %852  ;;  %v857_v13 = vpop.permute.xlu1 %856 }
 0x131   : > { %v878_v18 = vmax.f32 %v862_v52, %v866_v37  ;;  %v865_v26 = vadd.f32 %v1443_v63, %v1481_v35  ;;  %v870_v56 = vadd.f32 %v841_v58, %v586_v42  ;;  %v869_v59 = vadd.f32 %v837_v62, %v585_v47 }
 0x132   : > { %v684_v7 = vmax.f32 %v681_v31, %v682_v24  ;;  %v786_v12 = vmax.f32 %v783_v14, %v784_v48  ;;  %v879_v9 = vmax.f32 %v875_v11, %v867_v49  ;;  %v868_v38 = vadd.f32 %v1553_v40, %v1452_v55 }
 0x133   : > { %v877_v50 = vmax.f32 %v861_v10, %v865_v26  ;;  %v882_v57 = vmax.f32 %v878_v18, %v870_v56  ;;  %v872_v0 = vadd.f32 %v849_v53, %v588_v43  ;;  %v871_v44 = vadd.f32 %v845_v32, %v1498_v8 }
 0x134   : > { %v685_v1 = vmax.f32 %v683_v3, %v684_v7  ;;  %v787_v22 = vmax.f32 %v785_v19, %v786_v12  ;;  %v880_v61 = vmax.f32 %v876_v5, %v868_v38  ;;  %v873_v63 = vadd.f32 %v853_v45, %v589_v6 }
 0x135   : > { %v881_v35 = vmax.f32 %v877_v50, %v869_v59  ;;  %v874_v42 = vadd.f32 %v857_v13, %v1545_v60  ;;  %v883_v15 = vmax.f32 %v879_v9, %v871_v44  ;;  %vm897_vm1 = vcmask 1040384  }
 0x136   : > { %v686_v36 = vrot.slane %v685_v1, 4  ;;  %v788_v47 = vrot.slane %v787_v22, 4  ;;  %v884_v62 = vmax.f32 %v880_v61, %v872_v0  ;;  %vm899_vm2 = vcmask 1041408  }
 0x137   : > { %v885_v28 = vmax.f32 %v881_v35, %v873_v63  ;;  %v886_v46 = vmax.f32 %v882_v57, %v874_v42 }
 0x138   : > { %v687_v54 = vmax.f32 %v685_v1, %v686_v36  ;;  %v789_v55 = vmax.f32 %v787_v22, %v788_v47  ;;  %v887_v40 = vmax.f32 %v883_v15, %v884_v62 }
 0x139   : > { %v888_v33 = vmax.f32 %v885_v28, %v886_v46 }
 0x13a   : > { %v688_v43 = vrot.slane %v687_v54, 2  ;;  %v790_v39 = vrot.slane %v789_v55, 2 }
 0x13b   : > { %v889_v58 = vmax.f32 %v887_v40, %v888_v33 }
 0x13c   : > { %v689_v8 = vmax.f32 %v687_v54, %v688_v43  ;;  %v791_v32 = vmax.f32 %v789_v55, %v790_v39 }
 0x13d   : > { %v890_v29 = vrot.slane %v889_v58, 4 }
 0x13e   : > { %v690_v24 = vrot.slane %v689_v8, 1  ;;  %v792_v27 = vrot.slane %v791_v32, 1 }
 0x13f   : > { %v891_v60 = vmax.f32 %v889_v58, %v890_v29 }
 0x140   : > { %v691_v2 = vmax.f32 %v689_v8, %v690_v24  ;;  %v793_v17 = vmax.f32 %v791_v32, %v792_v27 }
 0x141   : > { %v892_v10 = vrot.slane %v891_v60, 2 }
 0x142   : > { %v692_v4 = vsub.f32 %v691_v2, %v1688_v23  ;;  %v794_v41 = vsub.f32 %v793_v17, %v1688_v23 }
 0x143   : > { %v893_v6 = vmax.f32 %v891_v60, %v892_v10 }
 0x144   : > { %v898_v25 = vsel %vm897_vm1, %v692_v4, %v794_v41 }
 0x145   : > { %v894_v21 = vrot.slane %v893_v6, 1 }
 0x147   : > { %v895_v48 = vmax.f32 %v893_v6, %v894_v21 }
 0x149   : > { %v896_v51 = vsub.f32 %v895_v48, %v1688_v23 }
 0x14b   : > { %v900_v30 = vsel %vm899_vm2, %v898_v25, %v896_v51 }
 0x14c   : > { %1039 = vst [vmem:[%s1574_s4 + $0x4] sm:$0x7] %v900_v30 }
 0x14d PF: > { %s13_s14 = sadd.s32 1, %s1107_s14   ;;  %s1689_s12 = smov %s1103_s13 }
 0x14e   : > { %p10_p5 = scmp.ge.s32.totalorder %s13_s14, 4   ;;  %s1690_s13 = smov %s1692_s15 }
 0x150   :  { %12 = sbr.rel (!%p10_p5) target bundleno = 2 (0x2), region = 70 }

</bundles_post_ra>
